<compile_context>
chip_gen: v7x
topology: tpu7x:2x2x1
jax: 0.10.0
libtpu: 0.0.40
codegen_flags: <defaults>
</compile_context>

<pallas_src>
import numpy as np
import jax
import jax.numpy as jnp
from jax import lax
from jax.experimental import pallas as pl
from jax.experimental.pallas import tpu as pltpu


_VMEM = pl.BlockSpec(memory_space=pltpu.MemorySpace.VMEM)
_SMEM = pl.BlockSpec(memory_space=pltpu.MemorySpace.SMEM)


# ------------------------------ Pallas kernels -------------------------------

def fused_attention_combine(src, z_slab, wb_slab, bb_slab, q_slab):
    """scores -> softmax(score/sum) -> pair remap -> emb = sum_p (1+att_p) z_p.

    z_slab/wb/bb/q are 128-lane-dense row-major flattenings of the (N, F) data.
    src is the host-computed int32 source index encoding the sequential
    attention_weights[j] = attention_weights[i] overwrites.
    """
    P, K, L = z_slab.shape
    assert L == 128 and P <= 128

    def kernel(src_ref, z_ref, wb_ref, bb_ref, q_ref, emb_ref, att_ref, att_smem):
        wbv, bbv, qv = wb_ref[...], bb_ref[...], q_ref[...]

        # --- per-meta-path semantic score (EUP tanh + VPU mul + full reduce).
        # The reference divides by N here; that factor cancels in
        # proportions = score / sum(score), so it is omitted.
        scores = []
        for p in range(P):
            t = jnp.tanh(wbv * z_ref[p] + bbv)
            scores.append(jnp.sum(t * qv))

        # --- softmax(score / sum(score)) on a (1,128) vector: exp stays on the
        # EUP, no scalar transcendentals.
        lane = lax.broadcasted_iota(jnp.int32, (1, 128), 1)
        svec = jnp.zeros((1, 128), jnp.float32)
        for p in range(P):
            svec = jnp.where(lane == p, scores[p], svec)
        valid = lane < P
        total = jnp.sum(jnp.where(valid, svec, 0.0))
        props = svec / total                 # matches reference (fragile if sum ~ 0)
        masked = jnp.where(valid, props, jnp.float32(-1e30))
        m = jnp.max(masked)
        e = jnp.exp(masked - m)              # invalid lanes underflow to 0
        att_v = e / jnp.sum(e)
        for p in range(P):                   # scalars into SMEM for the dynamic remap
            att_smem[p] = jnp.sum(jnp.where(lane == p, att_v, 0.0))

        # --- isomorphic-pair remap (att[j] := att[i]) fused with the combine pass.
        acc = None
        for p in range(P):
            a = att_smem[src_ref[p]]
            att_ref[p] = a
            term = (1.0 + a) * z_ref[p]
            acc = term if acc is None else acc + term
        emb_ref[...] = acc

    return pl.pallas_call(
        kernel,
        out_shape=(jax.ShapeDtypeStruct((K, 128), jnp.float32),
                   jax.ShapeDtypeStruct((P,), jnp.float32)),
        in_specs=[_SMEM, _VMEM, _VMEM, _VMEM, _VMEM],
        out_specs=(_VMEM, _SMEM),
        scratch_shapes=[pltpu.SMEM((P,), jnp.float32)],
    )(src, z_slab, wb_slab, bb_slab, q_slab)


def mi_stats(x_flat, zcat, xproj_w, xproj_b, params):
    """One batched pass of the MI-estimator MLP over [z ; z_shuffle].

    Returns (3,) f32 in SMEM: [mean(s0), m = max(max(s1), 0), mean(exp(s1 - m))].
    """
    w1x, w1z, b1, w2, b2, w3t, b3 = params
    n2 = zcat.shape[0]
    n = n2 // 2

    def kernel(x_ref, xw_ref, xb_ref, z_ref, w1x_ref, w1z_ref, b1_ref,
               w2_ref, b2_ref, w3_ref, b3_ref, out_ref):
        # x_proj GEMV prologue (M=1), kept in VMEM instead of its own pallas_call.
        x_feat = jnp.dot(x_ref[...], xw_ref[...],
                         preferred_element_type=jnp.float32) + xb_ref[...]
        # Rank-1 x contribution to layer 1 (identical for every row / both halves).
        xc = jnp.dot(x_feat, w1x_ref[...],
                     preferred_element_type=jnp.float32) + b1_ref[...]
        # Batched (t0 stacked over t1) MLP; x-term added by broadcast.
        h = jnp.dot(z_ref[...], w1z_ref[...],
                    preferred_element_type=jnp.float32) + xc
        h = jnp.maximum(h, 0.0)
        h = jnp.dot(h, w2_ref[...], preferred_element_type=jnp.float32) + b2_ref[...]
        h = jnp.maximum(h, 0.0)
        # 256 -> 1 layer on the VPU/XLU (avoid an Mx1 MXU matmul and lane-sparse
        # (n,1) output stores); reductions emitted as SMEM scalars.
        s = jnp.sum(h * w3_ref[...], axis=-1, keepdims=True) + b3_ref[0]   # (2n, 1)
        rows = lax.broadcasted_iota(jnp.int32, (n2, 1), 0)
        is_t0 = rows < n
        out_ref[0] = jnp.sum(jnp.where(is_t0, s, 0.0)) / float(n)          # mean(s0)
        s1m = jnp.where(is_t0, jnp.float32(-1e30), s)
        m = jnp.max(jnp.maximum(s1m, 0.0))                                 # max(max(s1), 0)
        out_ref[1] = m
        out_ref[2] = jnp.sum(jnp.exp(s1m - m)) / float(n)                  # mean(exp(s1-m))

    # TODO(synk): if the real n / feature sizes grow, row-tile zcat over a
    # 'parallel' grid axis and set vmem_limit_bytes (v7x only has 64 MiB VMEM).
    return pl.pallas_call(
        kernel,
        out_shape=jax.ShapeDtypeStruct((3,), jnp.float32),
        in_specs=[_VMEM] * 10 + [_SMEM],
        out_specs=_SMEM,
    )(x_flat, xproj_w, xproj_b, zcat, w1x, w1z, b1, w2, b2, w3t, b3)


# ------------------------ host-side (non-kernel) helpers ----------------------

def wl_hash(edge_index, num_nodes, num_iterations=3):
    """WL colour-refinement canonical hash of a (2, E) edge_index (host side)."""
    edge_index = np.asarray(edge_index)
    adj = [[] for _ in range(num_nodes)]
    for s, d in zip(edge_index[0], edge_index[1]):
        adj[int(s)].append(int(d))
    colors = [0] * num_nodes
    for _ in range(num_iterations):
        sigs = [(colors[v], tuple(sorted(colors[u] for u in adj[v])))
                for v in range(num_nodes)]
        remap = {s: i for i, s in enumerate(sorted(set(sigs)))}
        colors = [remap[s] for s in sigs]
    return tuple(sorted(colors))


def _xavier(key, shape):
    fan_in = shape[0]
    fan_out = shape[1] if len(shape) > 1 else shape[0]
    limit = float(np.sqrt(6.0 / (fan_in + fan_out)))
    return jax.random.uniform(key, shape, jnp.float32, -limit, limit)


def _to_lane_slabs(a, K):
    """Flatten the trailing (N, F) dims row-major into zero-padded (K, 128)
    lane-dense slabs; leading dims are preserved."""
    lead = a.shape[:-2]
    flat = jnp.reshape(a, lead + (-1,))
    pad = K * 128 - flat.shape[-1]
    if pad:
        flat = jnp.pad(flat, [(0, 0)] * len(lead) + [(0, pad)])
    return jnp.reshape(flat, lead + (K, 128))


# ---------------------------------- module ------------------------------------

class HGAttentionIB:
    def __init__(self, node_feature_size, node_size, num_meta_paths, spatial,
                 beta=0.1, lambda_wl=0.1, gamma=0.1, seed=0):
        self.F = node_feature_size
        self.N = node_size
        self.P = num_meta_paths
        self.S = spatial                      # stands in for the hard-coded 116
        self.beta, self.lambda_wl, self.gamma = beta, lambda_wl, gamma
        self.K = (self.N * self.F + 127) // 128   # lane-dense slab rows

        k = jax.random.split(jax.random.PRNGKey(seed), 12)
        S2 = spatial * spatial
        F = node_feature_size
        N = node_size

        # x_proj: Linear(S*S, F); stored (in, out) so kernels do x @ W + b
        self.xproj_w = _xavier(k[0], (S2, F))
        self.xproj_b = jnp.zeros((1, F), jnp.float32)

        # attention parameters (logical) + precomputed 128-lane-dense slabs
        self.W = _xavier(k[1], (N, 1))
        self.b = jax.random.uniform(k[2], (N, 1), jnp.float32)
        self.q = _xavier(k[3], (N, F))
        self.wb_slab = _to_lane_slabs(jnp.broadcast_to(self.W, (N, F)), self.K)
        self.bb_slab = _to_lane_slabs(jnp.broadcast_to(self.b, (N, F)), self.K)
        self.q_slab = _to_lane_slabs(self.q, self.K)

        def mlp_params(keys):
            w1 = _xavier(keys[0], (2 * F, 512))
            return (
                w1[:F],                                   # x-half of layer-1 weight
                w1[F:],                                   # z-half of layer-1 weight
                jnp.zeros((1, 512), jnp.float32),
                _xavier(keys[1], (512, 256)), jnp.zeros((1, 256), jnp.float32),
                jnp.transpose(_xavier(keys[2], (256, 1))),  # (1,256) for VPU mul
                jnp.zeros((1,), jnp.float32),
            )

        self.mi_xz = mlp_params(k[4:7])
        self.mi_zy = mlp_params(k[7:10])
        # deterministic stand-in for torch.randperm in estimate_MI
        self._perm_key = jax.random.PRNGKey(seed + 1)

    def estimate_mi(self, x, z, params, key):
        n = z.shape[0]
        x_flat = jnp.reshape(x, (1, -1)).astype(jnp.float32)   # every row identical
        z_shuffle = z[jax.random.permutation(key, n)]
        zcat = jnp.concatenate([z, z_shuffle], axis=0)          # (2n, F)
        stats = mi_stats(x_flat, zcat, self.xproj_w, self.xproj_b, params)
        mean_s0, m, mean_exp = stats[0], stats[1], stats[2]
        # log(mean(exp(s1)) + 1e-8) == m + log(mean(exp(s1-m)) + 1e-8*exp(-m)),  m >= 0
        log_term = m + jnp.log(mean_exp + 1e-8 * jnp.exp(-m))
        return jnp.maximum(mean_s0 - log_term, 0.0)

    def forward(self, z_list, subgraph_list, num_nodes, x_orig, y_labels=None):
        # --- WL isomorphism pairing (host side, graph-structural control flow) ---
        # TODO(synk): exact nx.is_isomorphic has no Pallas equivalent; WL
        # colour-refinement hash equality is used as the pairing test here.
        hashes = [wl_hash(e, num_nodes) for e in subgraph_list]
        isomorphic_pairs = [(i, j) for i in range(self.P)
                            for j in range(i + 1, self.P) if hashes[i] == hashes[j]]
        # Fold the sequential attention_weights[j] = attention_weights[i]
        # overwrites into a single source-index remap, applied in-kernel.
        src = list(range(self.P))
        for i, j in isomorphic_pairs:
            src[j] = src[i]
        src = jnp.asarray(src, dtype=jnp.int32)

        z_stack = jnp.stack(z_list).astype(jnp.float32)          # (P, N, F)
        z_slab = _to_lane_slabs(z_stack, self.K)                 # (P, K, 128)

        # --- single fused kernel: scores -> softmax -> remap -> combine ---
        emb_slab, attention_weights = fused_attention_combine(
            src, z_slab, self.wb_slab, self.bb_slab, self.q_slab)
        emb = emb_slab.reshape(-1)[: self.N * self.F].reshape(self.N, self.F)

        # --- information-bottleneck terms ---
        I_XZ = self.estimate_mi(x_orig, emb, self.mi_xz, self._perm_key)
        # TODO(synk): y_labels branch of the reference relies on 116*116 == N*F
        # shape coincidences; only the y_labels=None path is implemented.
        I_ZY = jnp.asarray(0.0, jnp.float32)

        ib_loss = I_XZ - self.beta * I_ZY
        wl_loss = jnp.asarray(float(len(isomorphic_pairs)), jnp.float32)
        attention_reg = self.gamma * jnp.sum(attention_weights)
        total_loss = ib_loss + self.lambda_wl * wl_loss + attention_reg
        return emb, total_loss


# ------------------------------------ main -------------------------------------

if __name__ == "__main__":
    F = 32   # node_feature_size
    N = 16   # node_size   (871 in the original module)
    P = 3    # num_meta_paths
    S = 8    # spatial side of x_orig (116 in the original module)

    key = jax.random.PRNGKey(0)
    kz, kx = jax.random.split(key)
    z_list = [jax.random.normal(k, (N, F), jnp.float32)
              for k in jax.random.split(kz, P)]
    x_orig = jax.random.normal(kx, (1, S, S), jnp.float32)

    # subgraphs as (2, E) edge_index arrays; graphs 0 and 1 are isomorphic rings,
    # graph 2 is a star (not isomorphic to the rings).
    ring = np.stack([np.arange(N), (np.arange(N) + 1) % N]).astype(np.int64)
    perm = np.array([(3 * i + 1) % N for i in range(N)])
    ring_perm = perm[ring]
    star = np.stack([np.zeros(N - 1, np.int64), np.arange(1, N)]).astype(np.int64)
    subgraph_list = [ring, ring_perm, star]

    model = HGAttentionIB(node_feature_size=F, node_size=N,
                          num_meta_paths=P, spatial=S)
    emb, total_loss = model.forward(z_list, subgraph_list, N, x_orig)
    jax.block_until_ready((emb, total_loss))
    assert emb.shape == (N, F)
    assert total_loss.shape == ()
    print("KERNEL_OK")
</pallas_src>

<mosaic_0001>
module attributes {stable_mosaic.version = 11 : i64} {
  func.func @kernel(%arg0: memref<3xi32, #tpu.memory_space<smem>>, %arg1: memref<3x4x128xf32, #tpu.memory_space<vmem>>, %arg2: memref<4x128xf32, #tpu.memory_space<vmem>>, %arg3: memref<4x128xf32, #tpu.memory_space<vmem>>, %arg4: memref<4x128xf32, #tpu.memory_space<vmem>>, %arg5: memref<4x128xf32, #tpu.memory_space<vmem>>, %arg6: memref<3xf32, #tpu.memory_space<smem>>, %arg7: memref<3xf32, #tpu.memory_space<smem>>) attributes {dimension_semantics = [], scalar_prefetch = 0 : i64, scratch_operands = 1 : i64, tpu.core_type = #tpu.core_type<tc>} {
    %c0 = arith.constant 0 : index
    %c0_0 = arith.constant 0 : index
    %0 = vector.load %arg2[%c0, %c0_0] : memref<4x128xf32, #tpu.memory_space<vmem>>, vector<4x128xf32>
    %c0_1 = arith.constant 0 : index
    %c0_2 = arith.constant 0 : index
    %1 = vector.load %arg3[%c0_1, %c0_2] : memref<4x128xf32, #tpu.memory_space<vmem>>, vector<4x128xf32>
    %c0_3 = arith.constant 0 : index
    %c0_4 = arith.constant 0 : index
    %2 = vector.load %arg4[%c0_3, %c0_4] : memref<4x128xf32, #tpu.memory_space<vmem>>, vector<4x128xf32>
    %c0_5 = arith.constant 0 : index
    %c0_6 = arith.constant 0 : index
    %c0_7 = arith.constant 0 : index
    %3 = vector.load %arg1[%c0_5, %c0_6, %c0_7] : memref<3x4x128xf32, #tpu.memory_space<vmem>>, vector<1x4x128xf32>
    %4 = vector.shape_cast %3 : vector<1x4x128xf32> to vector<4x128xf32>
    %5 = arith.mulf %0, %4 : vector<4x128xf32>
    %6 = arith.addf %5, %1 : vector<4x128xf32>
    %7 = math.tanh %6 : vector<4x128xf32>
    %8 = arith.mulf %7, %2 : vector<4x128xf32>
    %9 = vector.shape_cast %8 : vector<4x128xf32> to vector<1x4x128xf32>
    %cst = arith.constant dense<0.000000e+00> : vector<1xf32>
    %10 = vector.multi_reduction <add>, %9, %cst [1, 2] : vector<1x4x128xf32> to vector<1xf32>
    %11 = vector.shape_cast %10 : vector<1xf32> to vector<1x1x1xf32>
    %12 = vector.extract %11[0, 0, 0] : f32 from vector<1x1x1xf32>
    %c1 = arith.constant 1 : index
    %c0_8 = arith.constant 0 : index
    %c0_9 = arith.constant 0 : index
    %13 = vector.load %arg1[%c1, %c0_8, %c0_9] : memref<3x4x128xf32, #tpu.memory_space<vmem>>, vector<1x4x128xf32>
    %14 = vector.shape_cast %13 : vector<1x4x128xf32> to vector<4x128xf32>
    %15 = arith.mulf %0, %14 : vector<4x128xf32>
    %16 = arith.addf %15, %1 : vector<4x128xf32>
    %17 = math.tanh %16 : vector<4x128xf32>
    %18 = arith.mulf %17, %2 : vector<4x128xf32>
    %19 = vector.shape_cast %18 : vector<4x128xf32> to vector<1x4x128xf32>
    %cst_10 = arith.constant dense<0.000000e+00> : vector<1xf32>
    %20 = vector.multi_reduction <add>, %19, %cst_10 [1, 2] : vector<1x4x128xf32> to vector<1xf32>
    %21 = vector.shape_cast %20 : vector<1xf32> to vector<1x1x1xf32>
    %22 = vector.extract %21[0, 0, 0] : f32 from vector<1x1x1xf32>
    %c2 = arith.constant 2 : index
    %c0_11 = arith.constant 0 : index
    %c0_12 = arith.constant 0 : index
    %23 = vector.load %arg1[%c2, %c0_11, %c0_12] : memref<3x4x128xf32, #tpu.memory_space<vmem>>, vector<1x4x128xf32>
    %24 = vector.shape_cast %23 : vector<1x4x128xf32> to vector<4x128xf32>
    %25 = arith.mulf %0, %24 : vector<4x128xf32>
    %26 = arith.addf %25, %1 : vector<4x128xf32>
    %27 = math.tanh %26 : vector<4x128xf32>
    %28 = arith.mulf %27, %2 : vector<4x128xf32>
    %29 = vector.shape_cast %28 : vector<4x128xf32> to vector<1x4x128xf32>
    %cst_13 = arith.constant dense<0.000000e+00> : vector<1xf32>
    %30 = vector.multi_reduction <add>, %29, %cst_13 [1, 2] : vector<1x4x128xf32> to vector<1xf32>
    %31 = vector.shape_cast %30 : vector<1xf32> to vector<1x1x1xf32>
    %32 = vector.extract %31[0, 0, 0] : f32 from vector<1x1x1xf32>
    %33 = tpu.iota {dimensions = array<i32: 1>} : vector<1x128xi32>
    %cst_14 = arith.constant 0.000000e+00 : f32
    %34 = vector.broadcast %cst_14 : f32 to vector<1x128xf32>
    %c0_i32 = arith.constant 0 : i32
    %35 = vector.broadcast %c0_i32 : i32 to vector<1x128xi32>
    %36 = arith.cmpi eq, %33, %35 : vector<1x128xi32>
    %37 = vector.broadcast %12 : f32 to vector<1x128xf32>
    %38 = arith.select %36, %37, %34 : vector<1x128xi1>, vector<1x128xf32>
    %c1_i32 = arith.constant 1 : i32
    %39 = vector.broadcast %c1_i32 : i32 to vector<1x128xi32>
    %40 = arith.cmpi eq, %33, %39 : vector<1x128xi32>
    %41 = vector.broadcast %22 : f32 to vector<1x128xf32>
    %42 = arith.select %40, %41, %38 : vector<1x128xi1>, vector<1x128xf32>
    %c2_i32 = arith.constant 2 : i32
    %43 = vector.broadcast %c2_i32 : i32 to vector<1x128xi32>
    %44 = arith.cmpi eq, %33, %43 : vector<1x128xi32>
    %45 = vector.broadcast %32 : f32 to vector<1x128xf32>
    %46 = arith.select %44, %45, %42 : vector<1x128xi1>, vector<1x128xf32>
    %c3_i32 = arith.constant 3 : i32
    %47 = vector.broadcast %c3_i32 : i32 to vector<1x128xi32>
    %48 = arith.cmpi slt, %33, %47 : vector<1x128xi32>
    %cst_15 = arith.constant 0.000000e+00 : f32
    %49 = vector.broadcast %cst_15 : f32 to vector<1x128xf32>
    %50 = arith.select %48, %46, %49 : vector<1x128xi1>, vector<1x128xf32>
    %51 = vector.shape_cast %50 : vector<1x128xf32> to vector<1x1x128xf32>
    %cst_16 = arith.constant dense<0.000000e+00> : vector<1xf32>
    %52 = vector.multi_reduction <add>, %51, %cst_16 [1, 2] : vector<1x1x128xf32> to vector<1xf32>
    %53 = vector.shape_cast %52 : vector<1xf32> to vector<1x1x1xf32>
    %54 = vector.extract %53[0, 0, 0] : f32 from vector<1x1x1xf32>
    %55 = vector.broadcast %54 : f32 to vector<1x128xf32>
    %56 = arith.divf %46, %55 : vector<1x128xf32>
    %cst_17 = arith.constant -1.000000e+30 : f32
    %57 = vector.broadcast %cst_17 : f32 to vector<1x128xf32>
    %58 = arith.select %48, %56, %57 : vector<1x128xi1>, vector<1x128xf32>
    %59 = vector.shape_cast %58 : vector<1x128xf32> to vector<1x1x128xf32>
    %cst_18 = arith.constant dense<0xFF800000> : vector<1xf32>
    %60 = vector.multi_reduction <maximumf>, %59, %cst_18 [1, 2] : vector<1x1x128xf32> to vector<1xf32>
    %61 = vector.shape_cast %60 : vector<1xf32> to vector<1x1x1xf32>
    %62 = vector.extract %61[0, 0, 0] : f32 from vector<1x1x1xf32>
    %63 = vector.broadcast %62 : f32 to vector<1x128xf32>
    %64 = arith.subf %58, %63 : vector<1x128xf32>
    %65 = math.exp %64 : vector<1x128xf32>
    %66 = vector.shape_cast %65 : vector<1x128xf32> to vector<1x1x128xf32>
    %cst_19 = arith.constant dense<0.000000e+00> : vector<1xf32>
    %67 = vector.multi_reduction <add>, %66, %cst_19 [1, 2] : vector<1x1x128xf32> to vector<1xf32>
    %68 = vector.shape_cast %67 : vector<1xf32> to vector<1x1x1xf32>
    %69 = vector.extract %68[0, 0, 0] : f32 from vector<1x1x1xf32>
    %70 = vector.broadcast %69 : f32 to vector<1x128xf32>
    %71 = arith.divf %65, %70 : vector<1x128xf32>
    %c0_i32_20 = arith.constant 0 : i32
    %72 = vector.broadcast %c0_i32_20 : i32 to vector<1x128xi32>
    %73 = arith.cmpi eq, %33, %72 : vector<1x128xi32>
    %cst_21 = arith.constant 0.000000e+00 : f32
    %74 = vector.broadcast %cst_21 : f32 to vector<1x128xf32>
    %75 = arith.select %73, %71, %74 : vector<1x128xi1>, vector<1x128xf32>
    %76 = vector.shape_cast %75 : vector<1x128xf32> to vector<1x1x128xf32>
    %cst_22 = arith.constant dense<0.000000e+00> : vector<1xf32>
    %77 = vector.multi_reduction <add>, %76, %cst_22 [1, 2] : vector<1x1x128xf32> to vector<1xf32>
    %78 = vector.shape_cast %77 : vector<1xf32> to vector<1x1x1xf32>
    %79 = vector.extract %78[0, 0, 0] : f32 from vector<1x1x1xf32>
    %c0_23 = arith.constant 0 : index
    %80 = memref.load %arg7[%c0_23] : memref<3xf32, #tpu.memory_space<smem>>
    memref.store %79, %arg7[%c0_23] : memref<3xf32, #tpu.memory_space<smem>>
    %c1_i32_24 = arith.constant 1 : i32
    %81 = vector.broadcast %c1_i32_24 : i32 to vector<1x128xi32>
    %82 = arith.cmpi eq, %33, %81 : vector<1x128xi32>
    %cst_25 = arith.constant 0.000000e+00 : f32
    %83 = vector.broadcast %cst_25 : f32 to vector<1x128xf32>
    %84 = arith.select %82, %71, %83 : vector<1x128xi1>, vector<1x128xf32>
    %85 = vector.shape_cast %84 : vector<1x128xf32> to vector<1x1x128xf32>
    %cst_26 = arith.constant dense<0.000000e+00> : vector<1xf32>
    %86 = vector.multi_reduction <add>, %85, %cst_26 [1, 2] : vector<1x1x128xf32> to vector<1xf32>
    %87 = vector.shape_cast %86 : vector<1xf32> to vector<1x1x1xf32>
    %88 = vector.extract %87[0, 0, 0] : f32 from vector<1x1x1xf32>
    %c1_27 = arith.constant 1 : index
    %89 = memref.load %arg7[%c1_27] : memref<3xf32, #tpu.memory_space<smem>>
    memref.store %88, %arg7[%c1_27] : memref<3xf32, #tpu.memory_space<smem>>
    %c2_i32_28 = arith.constant 2 : i32
    %90 = vector.broadcast %c2_i32_28 : i32 to vector<1x128xi32>
    %91 = arith.cmpi eq, %33, %90 : vector<1x128xi32>
    %cst_29 = arith.constant 0.000000e+00 : f32
    %92 = vector.broadcast %cst_29 : f32 to vector<1x128xf32>
    %93 = arith.select %91, %71, %92 : vector<1x128xi1>, vector<1x128xf32>
    %94 = vector.shape_cast %93 : vector<1x128xf32> to vector<1x1x128xf32>
    %cst_30 = arith.constant dense<0.000000e+00> : vector<1xf32>
    %95 = vector.multi_reduction <add>, %94, %cst_30 [1, 2] : vector<1x1x128xf32> to vector<1xf32>
    %96 = vector.shape_cast %95 : vector<1xf32> to vector<1x1x1xf32>
    %97 = vector.extract %96[0, 0, 0] : f32 from vector<1x1x1xf32>
    %c2_31 = arith.constant 2 : index
    %98 = memref.load %arg7[%c2_31] : memref<3xf32, #tpu.memory_space<smem>>
    memref.store %97, %arg7[%c2_31] : memref<3xf32, #tpu.memory_space<smem>>
    %c0_32 = arith.constant 0 : index
    %99 = memref.load %arg0[%c0_32] : memref<3xi32, #tpu.memory_space<smem>>
    %100 = arith.index_cast %99 : i32 to index
    %101 = memref.load %arg7[%100] : memref<3xf32, #tpu.memory_space<smem>>
    %c0_33 = arith.constant 0 : index
    %102 = memref.load %arg6[%c0_33] : memref<3xf32, #tpu.memory_space<smem>>
    memref.store %101, %arg6[%c0_33] : memref<3xf32, #tpu.memory_space<smem>>
    %cst_34 = arith.constant 1.000000e+00 : f32
    %103 = arith.addf %cst_34, %101 : f32
    %c0_35 = arith.constant 0 : index
    %c0_36 = arith.constant 0 : index
    %c0_37 = arith.constant 0 : index
    %104 = vector.load %arg1[%c0_35, %c0_36, %c0_37] : memref<3x4x128xf32, #tpu.memory_space<vmem>>, vector<1x4x128xf32>
    %105 = vector.shape_cast %104 : vector<1x4x128xf32> to vector<4x128xf32>
    %106 = vector.broadcast %103 : f32 to vector<4x128xf32>
    %107 = arith.mulf %106, %105 : vector<4x128xf32>
    %c1_38 = arith.constant 1 : index
    %108 = memref.load %arg0[%c1_38] : memref<3xi32, #tpu.memory_space<smem>>
    %109 = arith.index_cast %108 : i32 to index
    %110 = memref.load %arg7[%109] : memref<3xf32, #tpu.memory_space<smem>>
    %c1_39 = arith.constant 1 : index
    %111 = memref.load %arg6[%c1_39] : memref<3xf32, #tpu.memory_space<smem>>
    memref.store %110, %arg6[%c1_39] : memref<3xf32, #tpu.memory_space<smem>>
    %cst_40 = arith.constant 1.000000e+00 : f32
    %112 = arith.addf %cst_40, %110 : f32
    %c1_41 = arith.constant 1 : index
    %c0_42 = arith.constant 0 : index
    %c0_43 = arith.constant 0 : index
    %113 = vector.load %arg1[%c1_41, %c0_42, %c0_43] : memref<3x4x128xf32, #tpu.memory_space<vmem>>, vector<1x4x128xf32>
    %114 = vector.shape_cast %113 : vector<1x4x128xf32> to vector<4x128xf32>
    %115 = vector.broadcast %112 : f32 to vector<4x128xf32>
    %116 = arith.mulf %115, %114 : vector<4x128xf32>
    %117 = arith.addf %107, %116 : vector<4x128xf32>
    %c2_44 = arith.constant 2 : index
    %118 = memref.load %arg0[%c2_44] : memref<3xi32, #tpu.memory_space<smem>>
    %119 = arith.index_cast %118 : i32 to index
    %120 = memref.load %arg7[%119] : memref<3xf32, #tpu.memory_space<smem>>
    %c2_45 = arith.constant 2 : index
    %121 = memref.load %arg6[%c2_45] : memref<3xf32, #tpu.memory_space<smem>>
    memref.store %120, %arg6[%c2_45] : memref<3xf32, #tpu.memory_space<smem>>
    %cst_46 = arith.constant 1.000000e+00 : f32
    %122 = arith.addf %cst_46, %120 : f32
    %c2_47 = arith.constant 2 : index
    %c0_48 = arith.constant 0 : index
    %c0_49 = arith.constant 0 : index
    %123 = vector.load %arg1[%c2_47, %c0_48, %c0_49] : memref<3x4x128xf32, #tpu.memory_space<vmem>>, vector<1x4x128xf32>
    %124 = vector.shape_cast %123 : vector<1x4x128xf32> to vector<4x128xf32>
    %125 = vector.broadcast %122 : f32 to vector<4x128xf32>
    %126 = arith.mulf %125, %124 : vector<4x128xf32>
    %127 = arith.addf %117, %126 : vector<4x128xf32>
    %c0_50 = arith.constant 0 : index
    %c0_51 = arith.constant 0 : index
    %128 = vector.load %arg5[%c0_50, %c0_51] : memref<4x128xf32, #tpu.memory_space<vmem>>, vector<4x128xf32>
    tpu.vector_store %arg5[%c0_50, %c0_51], %127 {strides = array<i32>} : memref<4x128xf32, #tpu.memory_space<vmem>>, vector<4x128xf32>,
    return
  }
}

</mosaic_0001>

<bundles_post_ra>
// kernel: tpu_custom_call.1
= control target key start
LH: loop header
LB: loop body
LE: loop exit
PB: predicated region body
PF: predicated region fallthrough
CT: control target
= control target key end

     0   :  { %12 = vsyncpa [#allocation6], 0  ;;  %s478_s0 = inlined_call_operand.hbm [shape: s32[3], index: 0, kind: input, shape index: {}]   ;;  %s479_s1 = inlined_call_operand.hbm [shape: f32[3,4,128], index: 1, kind: input, shape index: {}]   ;;  %s480_s2 = inlined_call_operand.vmem [shape: f32[4,128], index: 2, kind: input, shape index: {}]   ;;  %s481_s3 = inlined_call_operand.vmem [shape: f32[4,128], index: 3, kind: input, shape index: {}]   ;;  %s482_s4 = inlined_call_operand.vmem [shape: f32[4,128], index: 4, kind: input, shape index: {}]   ;;  %s483_s5 = inlined_call_operand.hbm [shape: f32[4,128], index: 5, kind: output, shape index: {0}]   ;;  %s484_s6 = inlined_call_operand.hbm [shape: f32[3], index: 6, kind: output, shape index: {1}]  }
   0x1   :  { %13 = vsyncpa [#allocation4], 0 }
   0x2   :  { %14 = vsyncpa [#allocation5], 0 }
   0x3   :  { %15 = vsyncpa [#allocation7], 0  ;;  %s281_s23 = scalar_lea.hbm %s478_s0, 16 }
   0x4   :  { %p282_p0 = scmp.ne.s32.totalorder %s478_s0, %s281_s23  ;;  %p285_p1 = scmp.lt.u32.totalorder %s281_s23, %s478_s0 }
   0x6   :  { %p287_p2 = pnand %p285_p1, %p282_p0 }
   0x8   :  { %290 = shalt.err (!%p287_p2)
}
   0x9   :  { %s353_s28 = smov [#allocation3]   ;;  %s354_s7 = smov [#allocation8]  }
   0xa   :  { %23 = dma.hbm_to_smem %s478_s0, 16, %s353_s28, [#allocation6]  }
   0xb   :  { %s29_s8 = sshll.u32 %s354_s7, 4  ;;  %s291_s11 = scalar_lea.hbm %s479_s1, 192  ;;  %s30_s8 = int_to_ptr.vmem [resolvable:$true] %s29_s8 }
   0xc   :  { %p292_p3 = scmp.ne.s32.totalorder %s479_s1, %s291_s11  ;;  %p295_p4 = scmp.lt.u32.totalorder %s291_s11, %s479_s1 }
   0xe   :  { %p297_p5 = pnand %p295_p4, %p292_p3 }
  0x10   :  { %300 = shalt.err (!%p297_p5)
}
  0x11   :  { %s301_s16 = scalar_lea.vmem %s30_s8, 192  ;;  %p306_p7 = scmp.lt.s32.totalorder %s30_s8, %s30_s8 }
  0x12   :  { %p302_p6 = scmp.ne.s32.totalorder %s30_s8, %s301_s16  ;;  %p307_p8 = scmp.lt.s32.totalorder %s301_s16, %s301_s16 }
  0x14   :  { %p308_p9 = por %p307_p8, %p306_p7 }
  0x16   :  { %p309_p10 = pnand %p308_p9, %p302_p6 }
  0x18   :  { %312 = shalt.err (!%p309_p10)
}
  0x19   :  { %s355_s0 = smov 64   ;;  %s356_s17 = smov 4  }
  0x1a   :  { %35 = dma.hbm_to_vmem [thread:$0]  %s479_s1, 192, %s30_s8, [#allocation4], %s355_s0, %s355_s0, %s356_s17  }
  0x1b   :  { %345 = dma.done.wait [#allocation6], 16  }
  0x1c   :  { %346 = vsyncadd [#allocation6], 4294967280 }
  0x1d   :  { %347 = dma.done.wait [#allocation4], 192  }
  0x1e   :  { %348 = vsyncadd [#allocation4], 4294967104 }
  0x1f   :  { %48 = sfence }
  0x20   :  { %v49_v0 = vld [vmem:[%s480_s2] sm:$0xf]  ;;  %v52_v3 = vld [vmem:[#allocation8] sm:$0xf]  ;;  %v69_v6 = vld [vmem:[#allocation8 + $0x4] sm:$0xf]  ;;  %v100_v42 = vlaneseq }
  0x21   :  { %v50_v1 = vld [vmem:[%s481_s3] sm:$0xf]  ;;  %v53_v5 = vmul.f32 %v52_v3, %v49_v0  ;;  %v70_v7 = vmul.f32 %v69_v6, %v49_v0  ;;  %vm57_vm0 = vcmask 1043456   ;;  %vm113_vm5 = vcmask 1040384   ;;  %s187_s28 = sld [smem:[#allocation3]]  ;;  %s243_s29 = sld [smem:[#allocation3 + $0x1]] }
  0x22   :  { %v85_v2 = vld [vmem:[#allocation8 + $0x8] sm:$0xf]  ;;  %v427_v43 = vand.u32 127, %v100_v42  ;;  %s244_s30 = sld [smem:[#allocation3 + $0x2]]  ;;  %v192_v42 = vld [vmem:[#allocation8] sm:$0xf] }
  0x23   :  { %v86_v4 = vmul.f32 %v85_v2, %v49_v0  ;;  %v54_v9 = vadd.f32 %v53_v5, %v50_v1  ;;  %v71_v10 = vadd.f32 %v70_v7, %v50_v1  ;;  %v51_v11 = vld [vmem:[%s482_s4] sm:$0xf]  ;;  %s357_s16 = smov [#allocation9]   ;;  %s313_s19 = scalar_lea.hbm %s484_s6, 16 }
  0x24   :  { %vm102_vm1 = vcmp.eq.s32.totalorder %v427_v43, 0  ;;  %vm105_vm2 = vcmp.eq.s32.totalorder %v427_v43, 1  ;;  %vm108_vm3 = vcmp.eq.s32.totalorder %v427_v43, 2  ;;  %vm111_vm4 = vcmp.lt.s32.totalorder %v427_v43, 3  ;;  %v200_v43 = vld [vmem:[#allocation8 + $0x4] sm:$0xf]  ;;  %p314_p11 = scmp.ne.s32.totalorder %s484_s6, %s313_s19  ;;  %p317_p12 = scmp.lt.u32.totalorder %s313_s19, %s484_s6 }
  0x25   :  { %v87_v8 = vadd.f32 %v86_v4, %v50_v1  ;;  %s220_s0 = sshll.u32 %s357_s16, 4  ;;  %s221_s0 = int_to_ptr.vmem [resolvable:$true] %s220_s0 }
  0x26   :  { %p319_p13 = pnand %p317_p12, %p314_p11 }
  0x27   :  { %269 = vtanh.f32 %v87_v8 }
  0x28   :  { %271 = vtanh.f32 %v54_v9 }
  0x29   :  { %273 = vtanh.f32 %v71_v10 }
  0x31   :  { %v270_v12 = vpop.eup %269 }
  0x32   :  { %v272_v13 = vpop.eup %271  ;;  %v89_v14 = vmul.f32 %v270_v12, %v51_v11 }
  0x33   :  { %v274_v15 = vpop.eup %273  ;;  %v56_v16 = vmul.f32 %v272_v13, %v51_v11 }
  0x34   :  { %v90_v17 = vsel %vm57_vm0, %v89_v14, 0.0  ;;  %v73_v18 = vmul.f32 %v274_v15, %v51_v11 }
  0x35   :  { %91 = vadd.xlane.f32.xlu1 %v90_v17  ;;  %v58_v19 = vsel %vm57_vm0, %v56_v16, 0.0 }
  0x36   :  { %59 = vadd.xlane.f32.xlu0 %v58_v19  ;;  %v74_v20 = vsel %vm57_vm0, %v73_v18, 0.0 }
  0x3a   :  { %75 = vadd.xlane.f32.xlu0 %v74_v20 }
  0xc2   :  { %v92_v21 = vpop.xlane.xlu1 %91 }
  0xc3   :  { %v93_v22 = vrot.slane %v92_v21, 4  ;;  %v60_v23 = vpop.xlane.xlu0 %59 }
  0xc4   :  { %v61_v24 = vrot.slane %v60_v23, 4 }
  0xc5   :  { %v94_v25 = vadd.f32 %v93_v22, %v92_v21 }
  0xc6   :  { %v62_v26 = vadd.f32 %v61_v24, %v60_v23 }
  0xc7   :  { %v95_v27 = vrot.slane %v94_v25, 2  ;;  %v76_v28 = vpop.xlane.xlu0 %75 }
  0xc8   :  { %v63_v29 = vrot.slane %v62_v26, 2  ;;  %v77_v30 = vrot.slane %v76_v28, 4 }
  0xc9   :  { %v96_v33 = vadd.f32 %v95_v27, %v94_v25 }
  0xca   :  { %v78_v31 = vadd.f32 %v77_v30, %v76_v28  ;;  %v64_v32 = vadd.f32 %v63_v29, %v62_v26 }
  0xcb   :  { %v97_v38 = vrot.slane %v96_v33, 1 }
  0xcc   :  { %v79_v34 = vrot.slane %v78_v31, 2  ;;  %v65_v35 = vrot.slane %v64_v32, 1 }
  0xcd   :  { %v98_v41 = vadd.f32 %v97_v38, %v96_v33 }
  0xce   :  { %v66_v36 = vadd.f32 %v65_v35, %v64_v32  ;;  %v80_v37 = vadd.f32 %v79_v34, %v78_v31 }
  0xd0   :  { %245 = vpush %v66_v36  ;;  %v81_v39 = vrot.slane %v80_v37, 1 }
  0xd2   :  { %v82_v40 = vadd.f32 %v81_v39, %v80_v37 }
  0xd4   :  { %247 = vpush %v82_v40 }
  0xd5   :  { %249 = vpush %v98_v41 }
 0x101   :  { %s246_s2 = spop %245 }
 0x102   :  { %v103_v44 = vstv %s246_s2 }
 0x103   :  { %v104_v45 = vsel %vm102_vm1, %v103_v44, 0.0 }
 0x105   :  { %s248_s3 = spop %247 }
 0x106   :  { %v106_v46 = vstv %s248_s3  ;;  %s250_s4 = spop %249 }
 0x107   :  { %v107_v47 = vsel %vm105_vm2, %v106_v46, %v104_v45  ;;  %v109_v48 = vstv %s250_s4  ;;  %v209_v45 = vld [vmem:[#allocation8 + $0x8] sm:$0xf] }
 0x108   :  { %v110_v49 = vsel %vm108_vm3, %v109_v48, %v107_v47 }
 0x109   :  { %v112_v50 = vsel %vm111_vm4, %v110_v49, 0.0 }
 0x10a   :  { %v114_v51 = vsel %vm113_vm5, %v112_v50, 0.0 }
 0x10b   :  { %115 = vadd.xlane.f32.xlu1 %v114_v51 }
 0x198   :  { %v116_v52 = vpop.xlane.xlu1 %115 }
 0x199   :  { %v117_v53 = vrot.slane %v116_v52, 4 }
 0x19b   :  { %v118_v54 = vadd.f32 %v117_v53, %v116_v52 }
 0x19d   :  { %v119_v55 = vrot.slane %v118_v54, 2 }
 0x19f   :  { %v120_v56 = vadd.f32 %v119_v55, %v118_v54 }
 0x1a1   :  { %v121_v57 = vrot.slane %v120_v56, 1 }
 0x1a3   :  { %v122_v58 = vadd.f32 %v121_v57, %v120_v56 }
 0x1a5   :  { %251 = vpush %v122_v58 }
 0x1d6   :  { %s252_s25 = spop %251 }
 0x1d7   :  { %v124_v59 = vstv %s252_s25 }
 0x1d8   :  { %275 = vrcp.f32 %v124_v59 }
 0x1e2   :  { %v276_v60 = vpop.eup %275 }
 0x1e3   :  { %v126_v61 = vmul.f32 %v276_v60, %v110_v49 }
 0x1e5   :  { %v127_v62 = vsel %vm111_vm4, %v126_v61, -1e+30 }
 0x1e6   :  { %128 = vmax.xlane.f32.xlu0 %v127_v62 }
 0x273   :  { %v129_v63 = vpop.xlane.xlu0 %128 }
 0x274   :  { %253 = vpush %v129_v63 }
 0x2a5   :  { %s254_s26 = spop %253 }
 0x2a6   :  { %v131_v0 = vstv %s254_s26 }
 0x2a7   :  { %v132_v1 = vsub.f32 %v127_v62, %v131_v0 }
 0x2a9   :  { %v133_v2 = vmul.f32 1.442695, %v132_v1 }
 0x2ab   :  { %277 = vpow2.f32 %v133_v2 }
 0x2b5   :  { %v278_v3 = vpop.eup %277 }
 0x2b6   :  { %v135_v4 = vsel %vm113_vm5, %v278_v3, 0.0 }
 0x2b7   :  { %136 = vadd.xlane.f32.xlu1 %v135_v4 }
 0x344   :  { %v137_v5 = vpop.xlane.xlu1 %136 }
 0x345   :  { %v138_v6 = vrot.slane %v137_v5, 4 }
 0x347   :  { %v139_v7 = vadd.f32 %v138_v6, %v137_v5 }
 0x349   :  { %v140_v8 = vrot.slane %v139_v7, 2 }
 0x34b   :  { %v141_v9 = vadd.f32 %v140_v8, %v139_v7 }
 0x34d   :  { %v142_v10 = vrot.slane %v141_v9, 1 }
 0x34f   :  { %v143_v11 = vadd.f32 %v142_v10, %v141_v9 }
 0x351   :  { %255 = vpush %v143_v11 }
 0x382   :  { %s256_s27 = spop %255 }
 0x383   :  { %v145_v12 = vstv %s256_s27 }
 0x384   :  { %279 = vrcp.f32 %v145_v12 }
 0x38e   :  { %v280_v13 = vpop.eup %279 }
 0x38f   :  { %v147_v14 = vmul.f32 %v280_v13, %v278_v3 }
 0x391   :  { %v161_v15 = vsel %vm105_vm2, %v147_v14, 0.0  ;;  %v148_v16 = vsel %vm102_vm1, %v147_v14, 0.0  ;;  %v174_v19 = vsel %vm108_vm3, %v147_v14, 0.0 }
 0x392   :  { %v162_v17 = vsel %vm113_vm5, %v161_v15, 0.0  ;;  %v149_v18 = vsel %vm113_vm5, %v148_v16, 0.0  ;;  %v175_v20 = vsel %vm113_vm5, %v174_v19, 0.0 }
 0x393   :  { %163 = vadd.xlane.f32.xlu1 %v162_v17  ;;  %150 = vadd.xlane.f32.xlu0 %v149_v18 }
 0x397   :  { %176 = vadd.xlane.f32.xlu0 %v175_v20 }
 0x420   :  { %v164_v21 = vpop.xlane.xlu1 %163  ;;  %v151_v22 = vpop.xlane.xlu0 %150 }
 0x421   :  { %v165_v23 = vrot.slane %v164_v21, 4  ;;  %v152_v24 = vrot.slane %v151_v22, 4 }
 0x423   :  { %v166_v25 = vadd.f32 %v165_v23, %v164_v21  ;;  %v153_v26 = vadd.f32 %v152_v24, %v151_v22 }
 0x424   :  { %v177_v27 = vpop.xlane.xlu0 %176 }
 0x425   :  { %v167_v28 = vrot.slane %v166_v25, 2  ;;  %v154_v29 = vrot.slane %v153_v26, 2  ;;  %v178_v30 = vrot.slane %v177_v27, 4 }
 0x427   :  { %v168_v31 = vadd.f32 %v167_v28, %v166_v25  ;;  %v179_v32 = vadd.f32 %v178_v30, %v177_v27  ;;  %v155_v33 = vadd.f32 %v154_v29, %v153_v26 }
 0x429   :  { %v180_v34 = vrot.slane %v179_v32, 2  ;;  %v156_v35 = vrot.slane %v155_v33, 1  ;;  %v169_v36 = vrot.slane %v168_v31, 1 }
 0x42b   :  { %v181_v37 = vadd.f32 %v180_v34, %v179_v32  ;;  %v157_v38 = vadd.f32 %v156_v35, %v155_v33  ;;  %v170_v39 = vadd.f32 %v169_v36, %v168_v31 }
 0x42d   :  { %257 = vpush %v157_v38  ;;  %v182_v40 = vrot.slane %v181_v37, 1 }
 0x42e   :  { %259 = vpush %v170_v39 }
 0x42f   :  { %v183_v41 = vadd.f32 %v182_v40, %v181_v37 }
 0x431   :  { %261 = vpush %v183_v41 }
 0x45e   :  { %s258_s7 = spop %257 }
 0x45f   :  { %160 = sst [smem:[#allocation2]] %s258_s7  ;;  %s260_s8 = spop %259 }
 0x460   :  { %173 = sst [smem:[#allocation2 + $0x1]] %s260_s8 }
 0x462   :  { %s262_s9 = spop %261 }
 0x463   :  { %186 = sst [smem:[#allocation2 + $0x2]] %s262_s9 }
 0x464   :  { %s188_s10 = sld [smem:[#allocation2 + %s187_s28]] }
 0x465   :  { %s196_s11 = sld [smem:[#allocation2 + %s243_s29]] }
 0x466   :  { %s205_s12 = sld [smem:[#allocation2 + %s244_s30]] }
 0x46a   :  { %s191_s13 = sadd.f32 1.0, %s188_s10 }
 0x46b   :  { %s199_s14 = sadd.f32 1.0, %s196_s11 }
 0x46c   :  { %v193_v44 = vstv %s191_s13  ;;  %s208_s15 = sadd.f32 1.0, %s205_s12 }
 0x46d   :  { %v194_v46 = vmul.f32 %v193_v44, %v192_v42  ;;  %v201_v47 = vstv %s199_s14  ;;  %190 = sst [smem:[#allocation10]] %s188_s10 }
 0x46e   :  { %v202_v48 = vmul.f32 %v201_v47, %v200_v43  ;;  %v210_v49 = vstv %s208_s15  ;;  %198 = sst [smem:[#allocation10 + $0x1]] %s196_s11 }
 0x46f   :  { %v211_v50 = vmul.f32 %v210_v49, %v209_v45  ;;  %207 = sst [smem:[#allocation10 + $0x2]] %s205_s12 }
 0x470   :  { %v203_v51 = vadd.f32 %v202_v48, %v194_v46 }
 0x471   :  { %322 = shalt.err (!%p319_p13)
}
 0x472   :  { %s358_s1 = smov [#allocation10]   ;;  %v212_v52 = vadd.f32 %v211_v50, %v203_v51  ;;  %s323_s3 = scalar_lea.vmem %s221_s0, 64 }
 0x473   :  { %231 = dma.smem_to_hbm %s358_s1, 16, %s484_s6, [#allocation7]  }
 0x474   :  { %213 = vst [vmem:[#allocation9] sm:$0xf] %v212_v52  ;;  %p324_p0 = scmp.ne.s32.totalorder %s221_s0, %s323_s3  ;;  %p328_p1 = scmp.lt.s32.totalorder %s221_s0, %s221_s0 }
 0x475   :  { %p329_p2 = scmp.lt.s32.totalorder %s323_s3, %s323_s3 }
 0x477   :  { %p330_p3 = por %p329_p2, %p328_p1 }
 0x479   :  { %p331_p4 = pnand %p330_p3, %p324_p0 }
 0x47b   :  { %334 = shalt.err (!%p331_p4)
}
 0x47c   :  { %s335_s26 = scalar_lea.hbm %s483_s5, 64 }
 0x47d   :  { %p336_p5 = scmp.ne.s32.totalorder %s483_s5, %s335_s26  ;;  %p339_p6 = scmp.lt.u32.totalorder %s335_s26, %s483_s5 }
 0x47f   :  { %p341_p7 = pnand %p339_p6, %p336_p5 }
 0x481   :  { %344 = shalt.err (!%p341_p7)
}
 0x482   :  { %223 = dma.vmem_to_hbm [thread:$0]  %s221_s0, 64, %s483_s5, [#allocation5]  }
 0x483   :  { %349 = dma.done.wait [#allocation5], 64  }
 0x484   :  { %350 = vsyncadd [#allocation5], 4294967232 }
 0x485   :  { %351 = dma.done.wait [#allocation7], 16  }
 0x486   :  { %352 = vsyncadd [#allocation7], 4294967280 }
 0x487   :  { %238 = sfence }
 0x488   :  { %239 = vsyncpa [#allocation4], 1 }
 0x489   :  { %240 = vsyncpa [#allocation5], 1 }
 0x48a   :  { %241 = vsyncpa [#allocation6], 1 }
 0x48b   :  { %242 = vsyncpa [#allocation7], 1 }

</bundles_post_ra>
